<compile_context>
chip_gen: v5e
topology: v5e:2x2
jax: 0.10.0
libtpu: 0.0.40
codegen_flags: <defaults>
</compile_context>

<pallas_src>
import math
import functools

import jax
import jax.numpy as jnp
from jax.experimental import pallas as pl
from jax.experimental.pallas import tpu as pltpu


def _round_up(a, b):
    return ((a + b - 1) // b) * b


def _shifted_conv_kernel(halo_ref, x_ref, w_ref, b_ref, o_ref, *, K, H, scale):
    """One (batch, time-tile) grid step.

    halo_ref: (H, C_in)       last H rows of the previous time tile
                              (content ignored / zeroed on the first tile
                               -> implements the causal left zero-padding)
    x_ref:    (TILE_S, C_in)  current time tile
    w_ref:    (K*C_in, C_out) tap-major flattened conv weight
    b_ref:    (1, C_out)      bias
    o_ref:    (TILE_S, C_out) output tile
    """
    t = pl.program_id(1)
    tile_s, c_in = x_ref.shape

    x = x_ref[...]
    halo = halo_ref[...]
    # First time tile of each sequence: the "history" is the causal zero pad.
    halo = jnp.where(t > 0, halo, jnp.zeros_like(halo))

    pad_rows = max(K - 1 - H, 0)  # only when the whole sequence is shorter than K-1
    parts = []
    if pad_rows:
        parts.append(jnp.zeros((pad_rows, c_in), x.dtype))
    parts.append(halo)
    parts.append(x)
    full = jnp.concatenate(parts, axis=0)        # (pad_rows + H + TILE_S, C_in)
    base = pad_rows + H - (K - 1)                # >= 0 by construction

    # im2col: build the K shifted views once, then a single deep-contraction
    # MXU matmul (contraction = K*C_in) instead of K shallow matmuls + adds.
    cols = [full[base + j: base + j + tile_s, :] for j in range(K)]
    im2col = cols[0] if K == 1 else jnp.concatenate(cols, axis=1)  # (TILE_S, K*C_in)

    acc = jnp.dot(im2col, w_ref[...], preferred_element_type=jnp.float32)
    acc = (acc + b_ref[...].astype(jnp.float32)) * scale
    o_ref[...] = acc.astype(o_ref.dtype)


def _choose_time_tile(S, K, align, target):
    """Pick (TILE_S, H): output rows per grid step and halo rows.
    H is a multiple of `align` and divides TILE_S whenever there is more than
    one time tile, so halo block indices line up exactly."""
    H = _round_up(max(K - 1, 1), align)
    if S <= max(target, H):
        return S, min(H, S)       # single time tile; halo content never used (t == 0)
    tile = max(H, (target // H) * H)
    return tile, H


def shifted_conv(x, weight, bias, kernel_size, *, compute_dtype=None, time_tile=512):
    """x: (N, S, C_in), weight: (C_out, C_in, K) [PyTorch Conv1d layout],
    bias: (C_out,). Returns (N, S, C_out).

    compute_dtype: optionally cast x / weight for the matmul (e.g. jnp.bfloat16
    on v6e/v7x); accumulation stays f32 via preferred_element_type."""
    N, S, C_in = x.shape
    C_out = weight.shape[0]
    K = kernel_size
    scale = math.sqrt(2.0 / (C_in * K))  # equalized-lr factor (applied to conv + bias)

    cdt = jnp.dtype(compute_dtype) if compute_dtype is not None else jnp.dtype(x.dtype)
    align = 8 if cdt.itemsize >= 4 else (16 if cdt.itemsize == 2 else 32)

    TILE_S, H = _choose_time_tile(S, K, align, time_tile)
    num_t = -(-S // TILE_S)
    h_blocks_per_tile = max(TILE_S // H, 1)

    # Tap-major flattened weight: row (j*C_in + c), col o  <-  weight[o, c, j]
    w_flat = jnp.transpose(weight, (2, 1, 0)).reshape(K * C_in, C_out).astype(cdt)
    b_2d = bias.reshape(1, C_out).astype(jnp.float32)
    x_c = x.astype(cdt)

    kernel = functools.partial(_shifted_conv_kernel, K=K, H=H, scale=scale)

    # VMEM budget: double-buffered in/out tiles + resident weight + live f32 values.
    itemsize = cdt.itemsize
    est = (2 * ((TILE_S + H) * C_in + TILE_S * C_out) * itemsize
           + K * C_in * C_out * itemsize
           + TILE_S * (K * C_in + C_out) * 4 + C_out * 4)
    vmem_limit = int(min(32 * 2 ** 20, max(24 * 2 ** 20, 2 * est)))

    return pl.pallas_call(
        kernel,
        out_shape=jax.ShapeDtypeStruct((N, S, C_out), x.dtype),
        grid_spec=pltpu.PrefetchScalarGridSpec(
            num_scalar_prefetch=0,
            grid=(N, num_t),
            in_specs=[
                # Halo: last H rows of the previous time tile (clamped at t=0;
                # its contribution is zeroed in-kernel -> causal left padding).
                pl.BlockSpec(
                    (None, H, C_in),
                    lambda n, t: (n, jnp.maximum(t * h_blocks_per_tile - 1, 0), 0),
                ),
                # Current time tile of x.
                pl.BlockSpec((None, TILE_S, C_in), lambda n, t: (n, t, 0)),
                # Weight / bias resident every step.
                pl.BlockSpec((K * C_in, C_out), lambda n, t: (0, 0)),
                pl.BlockSpec((1, C_out), lambda n, t: (0, 0)),
            ],
            out_specs=pl.BlockSpec((None, TILE_S, C_out), lambda n, t: (n, t, 0)),
        ),
        compiler_params=pltpu.CompilerParams(
            dimension_semantics=("parallel", "parallel"),
            vmem_limit_bytes=vmem_limit,
        ),
    )(x_c, x_c, w_flat, b_2d)   # x passed twice: halo view + current-tile view


def _reference(x, weight, bias, kernel_size):
    """Pure-JAX reference matching the PyTorch module."""
    N, S, C_in = x.shape
    C_out = weight.shape[0]
    K = kernel_size
    scale = math.sqrt(2.0 / (C_in * K))
    x_pad = jnp.pad(x, ((0, 0), (K - 1, 0), (0, 0)))
    out = jnp.zeros((N, S, C_out), jnp.float32)
    for j in range(K):
        out = out + jnp.einsum("nsc,co->nso", x_pad[:, j:j + S, :], weight[:, :, j].T)
    return ((out + bias[None, None, :]) * scale).astype(x.dtype)


if __name__ == "__main__":
    # ShiftedConv(dimOutputAR=32, dimOutputEncoder=32, kernelSize=4)
    dimOutputAR = 32       # C_in
    dimOutputEncoder = 32  # C_out
    kernelSize = 4
    N, S = 2, 8

    key = jax.random.PRNGKey(0)
    kx, kw, kb = jax.random.split(key, 3)

    x = jax.random.normal(kx, (N, S, dimOutputAR), dtype=jnp.float32)
    weight = jax.random.normal(
        kw, (dimOutputEncoder, dimOutputAR, kernelSize), dtype=jnp.float32
    )
    bias = 0.1 * jax.random.normal(kb, (dimOutputEncoder,), dtype=jnp.float32)

    # Small shape (single time tile).
    out = jax.block_until_ready(shifted_conv(x, weight, bias, kernelSize))
    ref = _reference(x, weight, bias, kernelSize)
    assert out.shape == (N, S, dimOutputEncoder)
    assert jnp.allclose(out, ref, atol=1e-4, rtol=1e-5), float(jnp.max(jnp.abs(out - ref)))

    # Longer sequence exercising the multi-tile time grid + halo path.
    S2 = 1024
    x2 = jax.random.normal(kx, (N, S2, dimOutputAR), dtype=jnp.float32)
    out2 = jax.block_until_ready(
        shifted_conv(x2, weight, bias, kernelSize, time_tile=256)
    )
    ref2 = _reference(x2, weight, bias, kernelSize)
    assert jnp.allclose(out2, ref2, atol=1e-4, rtol=1e-5), float(jnp.max(jnp.abs(out2 - ref2)))

    print("KERNEL_OK")
</pallas_src>

<mosaic_0001>
module attributes {stable_mosaic.version = 11 : i64} {
  func.func @_shifted_conv_kernel(%arg0: i32, %arg1: i32, %arg2: memref<1x8x32xf32, #tpu.memory_space<vmem>>, %arg3: memref<1x8x32xf32, #tpu.memory_space<vmem>>, %arg4: memref<128x32xf32, #tpu.memory_space<vmem>>, %arg5: memref<1x32xf32, #tpu.memory_space<vmem>>, %arg6: memref<1x8x32xf32, #tpu.memory_space<vmem>>) attributes {dimension_semantics = [#tpu.dimension_semantics<parallel>, #tpu.dimension_semantics<parallel>], iteration_bounds = array<i64: 2, 1>, scalar_prefetch = 0 : i64, scratch_operands = 0 : i64, tpu.core_type = #tpu.core_type<tc>, window_params = [{transform_indices = @transform_0, window_bounds = array<i64: 1, 8, 32>}, {transform_indices = @transform_1, window_bounds = array<i64: 1, 8, 32>}, {pipeline_mode = #tpu.pipeline_mode<synchronous>, transform_indices = @transform_2, window_bounds = array<i64: 128, 32>}, {pipeline_mode = #tpu.pipeline_mode<synchronous>, transform_indices = @transform_3, window_bounds = array<i64: 1, 32>}, {transform_indices = @transform_4, window_bounds = array<i64: 1, 8, 32>}]} {
    %c0 = arith.constant 0 : index
    %c0_0 = arith.constant 0 : index
    %c0_1 = arith.constant 0 : index
    %0 = vector.load %arg3[%c0, %c0_0, %c0_1] : memref<1x8x32xf32, #tpu.memory_space<vmem>>, vector<1x8x32xf32>
    %1 = vector.shape_cast %0 : vector<1x8x32xf32> to vector<8x32xf32>
    %c0_2 = arith.constant 0 : index
    %c0_3 = arith.constant 0 : index
    %c0_4 = arith.constant 0 : index
    %2 = vector.load %arg2[%c0_2, %c0_3, %c0_4] : memref<1x8x32xf32, #tpu.memory_space<vmem>>, vector<1x8x32xf32>
    %3 = vector.shape_cast %2 : vector<1x8x32xf32> to vector<8x32xf32>
    %c0_i32 = arith.constant 0 : i32
    %4 = arith.cmpi sgt, %arg1, %c0_i32 : i32
    %cst = arith.constant 0.000000e+00 : f32
    %5 = vector.broadcast %cst : f32 to vector<8x32xf32>
    %6 = arith.select %4, %3, %5 : vector<8x32xf32>
    %7 = tpu.concatenate %6, %1 in 0 : vector<8x32xf32>, vector<8x32xf32> -> vector<16x32xf32>
    %8 = vector.extract_strided_slice %7 {offsets = [5, 0], sizes = [8, 32], strides = [1, 1]} : vector<16x32xf32> to vector<8x32xf32>
    %9 = vector.extract_strided_slice %7 {offsets = [6, 0], sizes = [8, 32], strides = [1, 1]} : vector<16x32xf32> to vector<8x32xf32>
    %10 = vector.extract_strided_slice %7 {offsets = [7, 0], sizes = [8, 32], strides = [1, 1]} : vector<16x32xf32> to vector<8x32xf32>
    %11 = vector.extract_strided_slice %7 {offsets = [8, 0], sizes = [8, 32], strides = [1, 1]} : vector<16x32xf32> to vector<8x32xf32>
    %12 = tpu.concatenate %8, %9, %10, %11 in 1 : vector<8x32xf32>, vector<8x32xf32>, vector<8x32xf32>, vector<8x32xf32> -> vector<8x128xf32>
    %c0_5 = arith.constant 0 : index
    %c0_6 = arith.constant 0 : index
    %13 = vector.load %arg4[%c0_5, %c0_6] : memref<128x32xf32, #tpu.memory_space<vmem>>, vector<128x32xf32>
    %cst_7 = arith.constant dense<0.000000e+00> : vector<8x32xf32>
    %14 = tpu.matmul %12, %13, %cst_7 {dimension_numbers = #tpu.dot_dimension_numbers<[1], [0], [0], [1], [0, 0, 1, 1], [], []>} : vector<8x128xf32>, vector<128x32xf32>, vector<8x32xf32> -> vector<8x32xf32>
    %c0_8 = arith.constant 0 : index
    %c0_9 = arith.constant 0 : index
    %15 = vector.load %arg5[%c0_8, %c0_9] : memref<1x32xf32, #tpu.memory_space<vmem>>, vector<1x32xf32>
    %16 = vector.broadcast %15 : vector<1x32xf32> to vector<8x32xf32>
    %17 = arith.addf %14, %16 : vector<8x32xf32>
    %cst_10 = arith.constant 1.250000e-01 : f32
    %18 = vector.broadcast %cst_10 : f32 to vector<8x32xf32>
    %19 = arith.mulf %17, %18 : vector<8x32xf32>
    %c0_11 = arith.constant 0 : index
    %c0_12 = arith.constant 0 : index
    %c0_13 = arith.constant 0 : index
    %20 = vector.load %arg6[%c0_11, %c0_12, %c0_13] : memref<1x8x32xf32, #tpu.memory_space<vmem>>, vector<1x8x32xf32>
    %21 = vector.shape_cast %20 : vector<1x8x32xf32> to vector<8x32xf32>
    %22 = vector.shape_cast %19 : vector<8x32xf32> to vector<1x8x32xf32>
    tpu.vector_store %arg6[%c0_11, %c0_12, %c0_13], %22 {strides = array<i32>} : memref<1x8x32xf32, #tpu.memory_space<vmem>>, vector<1x8x32xf32>,
    return
  }
  func.func @transform_0(%arg0: i32, %arg1: i32) -> (i32, i32, i32) {
    %c1_i32 = arith.constant 1 : i32
    %0 = arith.muli %arg1, %c1_i32 : i32
    %c1_i32_0 = arith.constant 1 : i32
    %1 = arith.subi %0, %c1_i32_0 : i32
    %c0_i32 = arith.constant 0 : i32
    %2 = arith.maxsi %1, %c0_i32 : i32
    %c0_i32_1 = arith.constant 0 : i32
    %c0_i32_2 = arith.constant 0 : i32
    return %arg0, %2, %c0_i32_1 : i32, i32, i32
  }
  func.func @transform_1(%arg0: i32, %arg1: i32) -> (i32, i32, i32) {
    %c0_i32 = arith.constant 0 : i32
    %c0_i32_0 = arith.constant 0 : i32
    return %arg0, %arg1, %c0_i32 : i32, i32, i32
  }
  func.func @transform_2(%arg0: i32, %arg1: i32) -> (i32, i32) {
    %c0_i32 = arith.constant 0 : i32
    %c0_i32_0 = arith.constant 0 : i32
    %c0_i32_1 = arith.constant 0 : i32
    return %c0_i32, %c0_i32_0 : i32, i32
  }
  func.func @transform_3(%arg0: i32, %arg1: i32) -> (i32, i32) {
    %c0_i32 = arith.constant 0 : i32
    %c0_i32_0 = arith.constant 0 : i32
    %c0_i32_1 = arith.constant 0 : i32
    return %c0_i32, %c0_i32_0 : i32, i32
  }
  func.func @transform_4(%arg0: i32, %arg1: i32) -> (i32, i32, i32) {
    %c0_i32 = arith.constant 0 : i32
    %c0_i32_0 = arith.constant 0 : i32
    return %arg0, %arg1, %c0_i32 : i32, i32, i32
  }
}

</mosaic_0001>

<bundles_post_ra>
// kernel: tpu_custom_call.1
= control target key start
LH: loop header
LB: loop body
LE: loop exit
PB: predicated region body
PF: predicated region fallthrough
CT: control target
= control target key end

     0   :  { %9 = vsyncpa [#allocation3], 0  ;;  %s803_s0 = inlined_call_operand.vmem [shape: f32[2,8,32], index: 0, kind: input, shape index: {}]   ;;  %s804_s1 = inlined_call_operand.vmem [shape: f32[2,8,32], index: 1, kind: input, shape index: {}]   ;;  %s805_s2 = inlined_call_operand.vmem [shape: f32[128,32], index: 2, kind: input, shape index: {}]   ;;  %s806_s3 = inlined_call_operand.vmem [shape: f32[1,32], index: 3, kind: input, shape index: {}]   ;;  %s807_s4 = inlined_call_operand.hbm [shape: f32[2,8,32], index: 4, kind: output, shape index: {}]  }
   0x1   :  { %11 = vsyncpa [#allocation3 + $0x1], 0  ;;  %s652_s15 = smov 0   ;;  %s654_s16 = smov 0  }
   0x2   :  { %s656_s17 = smov 0   ;;  %s658_s0 = smov 0  }
   0x3   :  { %s660_s18 = smov 0   ;;  %s662_s19 = smov 0  }
   0x4 LB: > { %s461_s20 = sadd.s32 4294967295, %s621_s19   ;;  %s462_s21 = sadd.s32 4294967294, %s621_s19   ;;  %s621_s19 = sphi %s662_s19, %s17_s19   ;;  %s617_s18 = sphi %s660_s18, %s814_s18   ;;  %s613_s0 = sphi %s658_s0, %s813_s0   ;;  %s609_s17 = sphi %s656_s17, %s812_s17   ;;  %s605_s16 = sphi %s654_s16, %s811_s16   ;;  %s601_s15 = sphi %s652_s15, %s810_s15  }
   0x5   : > { %s29_s22 = sadd.s32 1, %s617_s18  ;;  %s142_s23 = sadd.s32 1, %s609_s17 }
   0x6   : > { %p31_p0 = scmp.ge.s32.totalorder %s29_s22, 2  ;;  %p152_p1 = scmp.ne.s32.totalorder %s609_s17, %s605_s16 }
   0x7   : > { %p153_p2 = scmp.eq.s32.totalorder %s461_s20, 1  ;;  %p158_p3 = scmp.ne.s32.totalorder %s605_s16, %s601_s15 }
   0x8   : > { %s816_s22 = smov (%p31_p0, %s29_s22), 0  ;;  %p159_p5 = scmp.eq.s32.totalorder %s462_s21, 1 }
   0x9   : > { %p692_p4 = por %p153_p2, %p152_p1  ;;  %s137_s25 = ssub.s32 %s617_s18, %s816_s22 }
   0xa   : > { %p465_p6 = scmp.ge.s32.totalorder %s621_s19, 1  ;;  %p140_p7 = scmp.eq.s32.totalorder %s137_s25, 0 }
   0xb   : > { %p699_p8 = por %p159_p5, %p158_p3  ;;  %p209_p9 = scmp.lt.s32.totalorder %s621_s19, 3 }
   0xc   : > { %s705_s27 = scalar_select %p140_p7, %s609_s17, %s142_s23  }
   0xd   : > { %p210_p10 = pnand %p465_p6, %p209_p9 }
   0xe   : > { %p260_p11 = scmp.lt.s32.totalorder (!%p210_p10), %s613_s0, 1  ;;  %s624_s28 = smov (!%p210_p10), 96  }
   0xf   : > { %213 = sbr.rel (%p210_p10) target bundleno = 293 (0x125), region = 36  ;;  %s625_s5 = smov (!%p210_p10), 32  }
  0x10   : > { %s626_s8 = smov (!%p210_p10), 64   ;;  %s470_s10 = sshll.u32 (!%p210_p10), %s613_s0, 3 }
  0x11   : > { %s370_s20 = scalar_lea.hbm (!%p210_p10), %s807_s4, %s470_s10 }
  0x12   : > { %s374_s25 = sshll.u32 (!%p210_p10), %s370_s20, 4  ;;  %s375_s25 = int_to_ptr.hbm [resolvable:$true] %s374_s25 }
  0x14   : > { %v324_v0 = vld [vmem:[%s805_s2 + $0x78] sm:$0xff]  ;;  %v323_v1 = vld [vmem:[%s805_s2 + $0x70] sm:$0xff]  ;;  %s261_s6 = scalar_select %p260_p11, %s613_s0, 1  ;;  %v322_v2 = vld [vmem:[%s805_s2 + $0x68] sm:$0xff]  ;;  %v623_v4 = vmov 0.0   ;;  %vm276_vm0 = vcmask 1046528  }
  0x15   : > { %336 = vmatpush.msra.mxu0 %v324_v0  ;;  %v321_v3 = vld [vmem:[%s805_s2 + $0x60] sm:$0xff]  ;;  %v277_v5 = vrot.slane %v623_v4, 1  ;;  %v320_v7 = vld [vmem:[%s805_s2 + $0x58] sm:$0xff]  ;;  %v319_v10 = vld [vmem:[%s805_s2 + $0x50] sm:$0xff]  ;;  %v287_v12 = vrot.slane %v623_v4, 2  ;;  %vm286_vm1 = vcmask 1045504  }
  0x16   : > { %s468_s9 = sshll.u32 %s261_s6, 3  ;;  %v318_v15 = vld [vmem:[%s805_s2 + $0x48] sm:$0xff]  ;;  %v317_v16 = vld [vmem:[%s805_s2 + $0x40] sm:$0xff]  ;;  %v316_v19 = vld [vmem:[%s805_s2 + $0x38] sm:$0xff]  ;;  %vm300_vm2 = vcmask 261120   ;;  %vm303_vm3 = vcmask 523264  }
  0x17   : > { %337 = vmatpush.msra.mxu0 %v323_v1  ;;  %s266_s14 = scalar_lea.vmem %s804_s1, %s468_s9  ;;  %v315_v20 = vld [vmem:[%s805_s2 + $0x30] sm:$0xff]  ;;  %v314_v21 = vld [vmem:[%s805_s2 + $0x28] sm:$0xff]  ;;  %v313_v22 = vld [vmem:[%s805_s2 + $0x20] sm:$0xff]  ;;  %vm306_vm4 = vcmask 785408   ;;  %vm331_vm5 = vcmask 1042432   ;;  %s563_s6 = scalar_lea.hbm %s807_s4, 16 }
  0x18   : > { %v267_v6 = vld [vmem:[%s266_s14] sm:$0xff]  ;;  %v312_v23 = vld [vmem:[%s805_s2 + $0x18] sm:$0xff]  ;;  %v311_v24 = vld [vmem:[%s805_s2 + $0x10] sm:$0xff] }
  0x19   : > { %338 = vmatpush.msra.mxu0 %v322_v2  ;;  %v278_v8 = vrot.slane %v267_v6, 1  ;;  %v296_v9 = vrot.slane %v267_v6, 3  ;;  %v288_v13 = vrot.slane %v267_v6, 2  ;;  %v310_v25 = vld [vmem:[%s805_s2 + $0x8] sm:$0xff]  ;;  %v309_v26 = vld [vmem:[%s805_s2] sm:$0xff] }
  0x1a   : > { %v542_v43 = vld [vmem:[%s806_s3] ss:$0 sm:$0xff] }
  0x1b   : > { %339 = vmatpush.msra.mxu0 %v321_v3  ;;  %v279_v11 = vsel %vm276_vm0, %v277_v5, %v278_v8  ;;  %297 = vrot.lane.b32.xlu1 %v296_v9, %s624_s28  ;;  %v289_v17 = vsel %vm286_vm1, %v287_v12, %v288_v13  ;;  %s557_s28 = sshra.s32 %s375_s25, 4  ;;  %s558_s28 = int_to_ptr.hbm [resolvable:$true] %s557_s28 }
  0x1c   : > { %v532_v14 = vpack.i.bf16 %v278_v8, %v279_v11  ;;  %v537_v18 = vpack.i.bf16 %v288_v13, %v289_v17  ;;  %s559_s29 = scalar_lea.hbm %s558_s28, 8  ;;  %p564_p1 = scmp.lt.s32.totalorder %s558_s28, %s807_s4 }
  0x1d   : > { %340 = vmatpush.msra.mxu0 %v320_v7  ;;  %p560_p12 = scmp.ne.s32.totalorder %s558_s28, %s559_s29  ;;  %p565_p2 = scmp.lt.s32.totalorder %s563_s6, %s559_s29 }
  0x1e   : > { %533 = vrot.lane.b32.xlu0 %v532_v14, %s625_s5 }
  0x1f   : > { %341 = vmatpush.msra.mxu0 %v319_v10  ;;  %p561_p13 = pnand %p560_p12, %p692_p4  ;;  %p566_p3 = por %p565_p2, %p564_p1 }
  0x21   : > { %342 = vmatpush.msra.mxu0 %v318_v15  ;;  %p562_p0 = pneg %p561_p13 }
  0x23   : > { %343 = vmatpush.msra.mxu0 %v317_v16  ;;  %p567_p5 = pnand %p566_p3, %p562_p0 }
  0x25   : > { %344 = vmatpush.msra.mxu0 %v316_v19 }
  0x26   : > { %538 = vrot.lane.b32.xlu0 %v537_v18, %s626_s8  ;;  %s244_s8 = sand.u32 1, %s605_s16  }
  0x27   : > { %345 = vmatpush.msra.mxu0 %v315_v20  ;;  %s466_s9 = sshll.u32 %s244_s8, 3  ;;  %s359_s0 = scalar_lea.sflag [#allocation3], %s244_s8 }
  0x28   : > { %s246_s21 = scalar_lea.vmem [#allocation2], %s466_s9 }
  0x29   : > { %346 = vmatpush.msra.mxu0 %v314_v21  ;;  %s372_s23 = sshll.u32 %s246_s21, 4  ;;  %s373_s23 = int_to_ptr.vmem [resolvable:$true] %s372_s23 }
  0x2b   : > { %347 = vmatpush.msra.mxu0 %v313_v22 }
  0x2d   : > { %348 = vmatpush.msra.mxu0 %v312_v23 }
  0x2f   : > { %349 = vmatpush.msra.mxu0 %v311_v24 }
  0x31   : > { %350 = vmatpush.msra.mxu0 %v310_v25 }
  0x33   : > { %351 = vmatpush.msra.mxu0 %v309_v26 }
  0x8d   : > { %v298_v33 = vpop.permute.xlu1 %297 }
  0x90   : > { %v534_v27 = vpop.permute.xlu0 %533 }
  0x91   : > { %v536_v28 = vunpack.i.h.bf16 %v534_v27  ;;  %v535_v29 = vunpack.i.l.bf16 %v534_v27 }
  0x93   : > { %v301_v34 = vsel %vm300_vm2, 0.0, %v535_v29  ;;  %v302_v35 = vsel %vm300_vm2, %v267_v6, %v536_v28 }
  0x98   : > { %v539_v30 = vpop.permute.xlu0 %538 }
  0x99   : > { %v541_v31 = vunpack.i.h.bf16 %v539_v30  ;;  %v540_v32 = vunpack.i.l.bf16 %v539_v30 }
  0x9b   : > { %v304_v36 = vsel %vm303_vm3, %v301_v34, %v540_v32  ;;  %v305_v37 = vsel %vm303_vm3, %v302_v35, %v541_v31 }
  0x9c   : > { %v307_v38 = vsel %vm306_vm4, %v304_v36, %v298_v33  ;;  %v308_v39 = vsel %vm306_vm4, %v305_v37, %v298_v33 }
  0x9d   : > { %v332_v40 = vrot.slane %v307_v38, 5  ;;  %v333_v41 = vrot.slane %v308_v39, 5 }
  0x9f   : > { %v334_v42 = vsel %vm331_vm5, %v332_v40, %v333_v41 }
  0xa0   : > { %352 = vmatmul.f32.vlgmr.msra.gmra.mxu0 %v334_v42 }
 0x11d   : > { %v353_v44 = vpop.f32.mrf.mxu0 }
 0x11e   : > { %v354_v45 = vadd.f32 %v542_v43, %v353_v44 }
 0x120   : > { %v356_v46 = vmul.f32 0.125, %v354_v45 }
 0x122   : > { %357 = vst.msk [vmem:[%s246_s21] sm:$0xff] %vm300_vm2, %v356_v46 }
 0x123   : > { %570 = shalt.err (!%p567_p5)
}
 0x124   : > { %473 = dma.vmem_to_hbm [thread:$0]  (%p692_p4), %s373_s23, 128, %s375_s25, %s359_s0  }
 0x125 PF: > { %p479_p6 = scmp.ge.s32.totalorder %s621_s19, 2  ;;  %s386_s8 = sand.u32 1, %s601_s15  }
 0x126   : > { %s387_s10 = scalar_lea.sflag [#allocation3], %s386_s8 }
 0x127   : > { %p476_p7 = pnand %p479_p6, %p699_p8 }
 0x129   : > { %p477_p9 = pneg %p476_p7 }
 0x12b   : > { %596 = dma.done.wait (%p477_p9), %s387_s10, 128  }
 0x12c   : > { %598 = vsyncadd (%p477_p9), %s387_s10, 4294967168  ;;  %s17_s19 = sadd.s32 1, %s621_s19   ;;  %s810_s15 = smov %s605_s16 }
 0x12d   : > { %p14_p10 = scmp.ge.s32.totalorder %s17_s19, 4   ;;  %s811_s16 = smov %s609_s17 }
 0x12e   : > { %s812_s17 = smov %s705_s27  ;;  %s813_s0 = smov %s617_s18 }
 0x12f   : > { %s814_s18 = smov %s816_s22  ;;  %16 = sbr.rel (!%p14_p10) target bundleno = 4 (0x4), region = 74 }
 0x134   :  { %393 = vsyncpa [#allocation3], 1 }
 0x135   :  { %395 = vsyncpa [#allocation3 + $0x1], 1 }

</bundles_post_ra>
